<compile_context>
chip_gen: v6e
topology: v6e:2x2x1
jax: 0.10.0
libtpu: 0.0.40
codegen_flags: <defaults>
</compile_context>

<pallas_src>
import functools

import jax
import jax.numpy as jnp
from jax import lax
from jax.experimental import pallas as pl
from jax.experimental.pallas import tpu as pltpu


def _hctc_kernel(labels_ref, a_ref, n_ref, c_ref, out_ref, *,
                 num_classes, margin, lambda_reg):
    eps = 1e-12  # matches F.normalize default eps
    C = num_classes

    a = a_ref[...].astype(jnp.float32)          # (B, D) anchors
    n = n_ref[...].astype(jnp.float32)          # (B, D) negatives
    c = c_ref[...].astype(jnp.float32)          # (C, D) centers
    lab = labels_ref[...]                       # (B, 1) int32

    B = a.shape[0]

    # ---- one-hot from a single vector compare (no serial scalar chain) ----
    class_ids = lax.broadcasted_iota(jnp.int32, (B, C), 1)     # (B, C)
    oh = (class_ids == lab).astype(jnp.float32)                # (B, C)
    # out-of-range labels match no class -> zero row, like the torch reference

    # batch_centers[b] = centers[labels[b]]   (MXU gather via one-hot matmul)
    bc = jnp.dot(oh, c, preferred_element_type=jnp.float32)    # (B, D)

    def l2_normalize(x):
        sumsq = jnp.sum(x * x, axis=1, keepdims=True)
        # x / max(||x||, eps)  ==  x * rsqrt(max(||x||^2, eps^2))  (EUP slot)
        return x * lax.rsqrt(jnp.maximum(sumsq, eps * eps))

    a_n = l2_normalize(a)                                      # (B, D)
    n_n = l2_normalize(n)                                      # (B, D)
    bc_n = l2_normalize(bc)                                    # (B, D)

    # (B, B) cosine similarity, contracting feature dim of both (no .T)
    sim = lax.dot_general(a_n, n_n, (((1,), (1,)), ((), ())),
                          preferred_element_type=jnp.float32)
    sim_neg = jnp.max(sim, axis=1, keepdims=True)              # (B, 1)
    sim_center = jnp.sum(a_n * bc_n, axis=1, keepdims=True)    # (B, 1)

    hctc = jnp.mean(jnp.maximum(sim_neg - sim_center + margin, 0.0))

    diff = c - bc                                              # (C, D); needs C == B
    reg = jnp.sum(jnp.sqrt(jnp.sum(diff * diff, axis=1, keepdims=True))) * lambda_reg

    out_ref[0, 0] = hctc + reg                                 # scalar via SMEM


def hctc_loss(anchors, negatives, labels, centers, *, margin, lambda_reg):
    B, D = anchors.shape
    C, Dc = centers.shape
    assert D == Dc
    # Same constraint as the PyTorch reference: `centers - batch_centers`
    # broadcast requires num_classes == batch_size.
    assert C == B, "HCTCLoss regularizer requires num_classes == batch_size"

    if labels.ndim == 1:
        labels = labels.reshape(B, 1)
    labels = labels.astype(jnp.int32)   # no-op if caller already passes int32 (B,1)

    kernel = functools.partial(
        _hctc_kernel, num_classes=C,
        margin=float(margin), lambda_reg=float(lambda_reg))

    vmem = pltpu.MemorySpace.VMEM
    out = pl.pallas_call(
        kernel,
        out_shape=jax.ShapeDtypeStruct((1, 1), jnp.float32),
        in_specs=[
            pl.BlockSpec(memory_space=vmem),   # labels (B, 1) int32
            pl.BlockSpec(memory_space=vmem),   # anchors (B, D)
            pl.BlockSpec(memory_space=vmem),   # negatives (B, D)
            pl.BlockSpec(memory_space=vmem),   # centers (C, D)
        ],
        out_specs=pl.BlockSpec(memory_space=pltpu.MemorySpace.SMEM),
    )(labels, anchors, negatives, centers)
    return out[0, 0]


def hctc_loss_ref(anchors, negatives, labels, centers, *, margin, lambda_reg):
    """Pure-JAX reference for a sanity check."""
    eps = 1e-12
    C = centers.shape[0]
    labels = labels.reshape(-1, 1)
    onehot = (labels == jnp.arange(C)[None, :]).astype(jnp.float32)
    bc = onehot @ centers

    def l2n(x):
        return x / jnp.maximum(jnp.linalg.norm(x, axis=1, keepdims=True), eps)

    a_n, n_n, bc_n = l2n(anchors), l2n(negatives), l2n(bc)
    sim_neg = jnp.max(a_n @ n_n.T, axis=1)
    sim_center = jnp.sum(a_n * bc_n, axis=1)
    hctc = jnp.mean(jax.nn.relu(sim_neg - sim_center + margin))
    reg = jnp.sum(jnp.linalg.norm(centers - bc, axis=1)) * lambda_reg
    return hctc + reg


if __name__ == "__main__":
    # Small shapes consistent with the module. num_classes == batch_size
    # (required by the reference's centers - batch_centers broadcast).
    B = 8            # batch_size == num_classes
    C = 8            # num_classes
    D = 32           # encoding_dim
    margin = 0.2
    lambda_reg = 0.01

    key = jax.random.PRNGKey(0)
    k_a, k_n, k_l, k_c = jax.random.split(key, 4)

    anchors = jax.random.normal(k_a, (B, D), dtype=jnp.float32)
    negatives = jax.random.normal(k_n, (B, D), dtype=jnp.float32)
    # built directly as (B, 1) int32 so the wrapper does zero extra XLA work
    labels = jax.random.randint(k_l, (B, 1), 0, C, dtype=jnp.int32)
    # deterministic stand-in for nn.Parameter(torch.randn(num_classes, encoding_dim))
    centers = jax.random.normal(k_c, (C, D), dtype=jnp.float32)

    loss = hctc_loss(anchors, negatives, labels, centers,
                     margin=margin, lambda_reg=lambda_reg)
    loss = jax.block_until_ready(loss)

    ref = hctc_loss_ref(anchors, negatives, labels, centers,
                        margin=margin, lambda_reg=lambda_reg)
    assert jnp.allclose(loss, ref, rtol=1e-5, atol=1e-5), (loss, ref)

    print("KERNEL_OK")
</pallas_src>

<mosaic_0001>
module attributes {stable_mosaic.version = 11 : i64} {
  func.func @_hctc_kernel(%arg0: memref<8x1xi32, #tpu.memory_space<vmem>>, %arg1: memref<8x32xf32, #tpu.memory_space<vmem>>, %arg2: memref<8x32xf32, #tpu.memory_space<vmem>>, %arg3: memref<8x32xf32, #tpu.memory_space<vmem>>, %arg4: memref<1x1xf32, #tpu.memory_space<smem>>) attributes {dimension_semantics = [], scalar_prefetch = 0 : i64, scratch_operands = 0 : i64, tpu.core_type = #tpu.core_type<tc>} {
    %c0 = arith.constant 0 : index
    %c0_0 = arith.constant 0 : index
    %0 = vector.load %arg1[%c0, %c0_0] : memref<8x32xf32, #tpu.memory_space<vmem>>, vector<8x32xf32>
    %c0_1 = arith.constant 0 : index
    %c0_2 = arith.constant 0 : index
    %1 = vector.load %arg2[%c0_1, %c0_2] : memref<8x32xf32, #tpu.memory_space<vmem>>, vector<8x32xf32>
    %c0_3 = arith.constant 0 : index
    %c0_4 = arith.constant 0 : index
    %2 = vector.load %arg3[%c0_3, %c0_4] : memref<8x32xf32, #tpu.memory_space<vmem>>, vector<8x32xf32>
    %c0_5 = arith.constant 0 : index
    %c0_6 = arith.constant 0 : index
    %3 = vector.load %arg0[%c0_5, %c0_6] : memref<8x1xi32, #tpu.memory_space<vmem>>, vector<8x1xi32>
    %4 = tpu.iota {dimensions = array<i32: 1>} : vector<8x8xi32>
    %5 = vector.broadcast %3 : vector<8x1xi32> to vector<8x8xi32>
    %6 = arith.cmpi eq, %4, %5 : vector<8x8xi32>
    %7 = arith.extui %6 : vector<8x8xi1> to vector<8x8xi32>
    %8 = arith.sitofp %7 : vector<8x8xi32> to vector<8x8xf32>
    %cst = arith.constant dense<0.000000e+00> : vector<8x32xf32>
    %9 = tpu.matmul %8, %2, %cst {dimension_numbers = #tpu.dot_dimension_numbers<[1], [0], [0], [1], [0, 0, 1, 1], [], []>} : vector<8x8xf32>, vector<8x32xf32>, vector<8x32xf32> -> vector<8x32xf32>
    %10 = arith.mulf %0, %0 : vector<8x32xf32>
    %cst_7 = arith.constant dense<0.000000e+00> : vector<8xf32>
    %11 = vector.multi_reduction <add>, %10, %cst_7 [1] : vector<8x32xf32> to vector<8xf32>
    %12 = vector.shape_cast %11 : vector<8xf32> to vector<8x1xf32>
    %cst_8 = arith.constant 1.000000e-24 : f32
    %13 = vector.broadcast %cst_8 : f32 to vector<8x1xf32>
    %14 = arith.maximumf %12, %13 : vector<8x1xf32>
    %15 = math.rsqrt %14 : vector<8x1xf32>
    %16 = vector.broadcast %15 : vector<8x1xf32> to vector<8x32xf32>
    %17 = arith.mulf %0, %16 : vector<8x32xf32>
    %18 = arith.mulf %1, %1 : vector<8x32xf32>
    %cst_9 = arith.constant dense<0.000000e+00> : vector<8xf32>
    %19 = vector.multi_reduction <add>, %18, %cst_9 [1] : vector<8x32xf32> to vector<8xf32>
    %20 = vector.shape_cast %19 : vector<8xf32> to vector<8x1xf32>
    %cst_10 = arith.constant 1.000000e-24 : f32
    %21 = vector.broadcast %cst_10 : f32 to vector<8x1xf32>
    %22 = arith.maximumf %20, %21 : vector<8x1xf32>
    %23 = math.rsqrt %22 : vector<8x1xf32>
    %24 = vector.broadcast %23 : vector<8x1xf32> to vector<8x32xf32>
    %25 = arith.mulf %1, %24 : vector<8x32xf32>
    %26 = arith.mulf %9, %9 : vector<8x32xf32>
    %cst_11 = arith.constant dense<0.000000e+00> : vector<8xf32>
    %27 = vector.multi_reduction <add>, %26, %cst_11 [1] : vector<8x32xf32> to vector<8xf32>
    %28 = vector.shape_cast %27 : vector<8xf32> to vector<8x1xf32>
    %cst_12 = arith.constant 1.000000e-24 : f32
    %29 = vector.broadcast %cst_12 : f32 to vector<8x1xf32>
    %30 = arith.maximumf %28, %29 : vector<8x1xf32>
    %31 = math.rsqrt %30 : vector<8x1xf32>
    %32 = vector.broadcast %31 : vector<8x1xf32> to vector<8x32xf32>
    %33 = arith.mulf %9, %32 : vector<8x32xf32>
    %cst_13 = arith.constant dense<0.000000e+00> : vector<8x8xf32>
    %34 = tpu.matmul %17, %25, %cst_13 {dimension_numbers = #tpu.dot_dimension_numbers<[1], [1], [0], [0], [0, 0, 1, 0], [], []>} : vector<8x32xf32>, vector<8x32xf32>, vector<8x8xf32> -> vector<8x8xf32>
    %cst_14 = arith.constant dense<0xFF800000> : vector<8xf32>
    %35 = vector.multi_reduction <maximumf>, %34, %cst_14 [1] : vector<8x8xf32> to vector<8xf32>
    %36 = vector.shape_cast %35 : vector<8xf32> to vector<8x1xf32>
    %37 = arith.mulf %17, %33 : vector<8x32xf32>
    %cst_15 = arith.constant dense<0.000000e+00> : vector<8xf32>
    %38 = vector.multi_reduction <add>, %37, %cst_15 [1] : vector<8x32xf32> to vector<8xf32>
    %39 = vector.shape_cast %38 : vector<8xf32> to vector<8x1xf32>
    %40 = arith.subf %36, %39 : vector<8x1xf32>
    %cst_16 = arith.constant 2.000000e-01 : f32
    %41 = vector.broadcast %cst_16 : f32 to vector<8x1xf32>
    %42 = arith.addf %40, %41 : vector<8x1xf32>
    %cst_17 = arith.constant 0.000000e+00 : f32
    %43 = vector.broadcast %cst_17 : f32 to vector<8x1xf32>
    %44 = arith.maximumf %42, %43 : vector<8x1xf32>
    %45 = vector.shape_cast %44 : vector<8x1xf32> to vector<1x8x1xf32>
    %cst_18 = arith.constant dense<0.000000e+00> : vector<1xf32>
    %46 = vector.multi_reduction <add>, %45, %cst_18 [1, 2] : vector<1x8x1xf32> to vector<1xf32>
    %47 = vector.shape_cast %46 : vector<1xf32> to vector<1x1x1xf32>
    %48 = vector.extract %47[0, 0, 0] : f32 from vector<1x1x1xf32>
    %cst_19 = arith.constant 8.000000e+00 : f32
    %49 = arith.divf %48, %cst_19 : f32
    %50 = arith.subf %2, %9 : vector<8x32xf32>
    %51 = arith.mulf %50, %50 : vector<8x32xf32>
    %cst_20 = arith.constant dense<0.000000e+00> : vector<8xf32>
    %52 = vector.multi_reduction <add>, %51, %cst_20 [1] : vector<8x32xf32> to vector<8xf32>
    %53 = vector.shape_cast %52 : vector<8xf32> to vector<8x1xf32>
    %54 = math.sqrt %53 : vector<8x1xf32>
    %55 = vector.shape_cast %54 : vector<8x1xf32> to vector<1x8x1xf32>
    %cst_21 = arith.constant dense<0.000000e+00> : vector<1xf32>
    %56 = vector.multi_reduction <add>, %55, %cst_21 [1, 2] : vector<1x8x1xf32> to vector<1xf32>
    %57 = vector.shape_cast %56 : vector<1xf32> to vector<1x1x1xf32>
    %58 = vector.extract %57[0, 0, 0] : f32 from vector<1x1x1xf32>
    %cst_22 = arith.constant 0.00999999977 : f32
    %59 = arith.mulf %58, %cst_22 : f32
    %60 = arith.addf %49, %59 : f32
    %c0_23 = arith.constant 0 : index
    %c0_24 = arith.constant 0 : index
    %61 = memref.load %arg4[%c0_23, %c0_24] : memref<1x1xf32, #tpu.memory_space<smem>>
    memref.store %60, %arg4[%c0_23, %c0_24] : memref<1x1xf32, #tpu.memory_space<smem>>
    return
  }
}

</mosaic_0001>

<bundles_post_ra>
// kernel: tpu_custom_call.1
= control target key start
LH: loop header
LB: loop body
LE: loop exit
PB: predicated region body
PF: predicated region fallthrough
CT: control target
= control target key end

     0   :  { %9 = vsyncpa [#allocation3], 0  ;;  %s437_s0 = inlined_call_operand.vmem [shape: s32[8,1], index: 0, kind: input, shape index: {}]   ;;  %s438_s1 = inlined_call_operand.vmem [shape: f32[8,32], index: 1, kind: input, shape index: {}]   ;;  %s439_s2 = inlined_call_operand.hbm [shape: f32[8,32], index: 2, kind: input, shape index: {}]   ;;  %s440_s3 = inlined_call_operand.hbm [shape: f32[8,32], index: 3, kind: input, shape index: {}]   ;;  %s441_s4 = inlined_call_operand.hbm [shape: f32[1,1], index: 4, kind: output, shape index: {}]  }
   0x1   :  { %10 = vsyncpa [#allocation6], 0 }
   0x2   :  { %11 = vsyncpa [#allocation4], 0  ;;  %s382_s15 = smov [#allocation2]   ;;  %s383_s17 = smov [#allocation5]  }
   0x3   :  { %s22_s16 = sshll.u32 %s382_s15, 4  ;;  %s32_s18 = sshll.u32 %s383_s17, 4  ;;  %s23_s16 = int_to_ptr.vmem [resolvable:$true] %s22_s16  ;;  %s33_s18 = int_to_ptr.vmem [resolvable:$true] %s32_s18 }
   0x4   :  { %s336_s19 = scalar_lea.vmem %s23_s16, 128  ;;  %p341_p1 = scmp.lt.s32.totalorder %s23_s16, %s23_s16 }
   0x5   :  { %p337_p0 = scmp.ne.s32.totalorder %s23_s16, %s336_s19  ;;  %p342_p2 = scmp.lt.s32.totalorder %s336_s19, %s336_s19 }
   0x7   :  { %p343_p3 = por %p342_p2, %p341_p1 }
   0x9   :  { %p344_p4 = pnand %p343_p3, %p337_p0 }
   0xb   :  { %347 = shalt.err (!%p344_p4)
}
   0xc   :  { %25 = dma.hbm_to_vmem [thread:$0]  %s439_s2, 128, %s23_s16, [#allocation3]  }
   0xd   :  { %s356_s22 = scalar_lea.vmem %s33_s18, 128  ;;  %p361_p6 = scmp.lt.s32.totalorder %s33_s18, %s33_s18 }
   0xe   :  { %p357_p5 = scmp.ne.s32.totalorder %s33_s18, %s356_s22  ;;  %p362_p7 = scmp.lt.s32.totalorder %s356_s22, %s356_s22 }
  0x10   :  { %p363_p8 = por %p362_p7, %p361_p6 }
  0x12   :  { %p364_p9 = pnand %p363_p8, %p357_p5 }
  0x14   :  { %367 = shalt.err (!%p364_p9)
}
  0x15   :  { %35 = dma.hbm_to_vmem [thread:$0]  %s440_s3, 128, %s33_s18, [#allocation6]  }
  0x16   :  { %376 = dma.done.wait [#allocation3], 128  }
  0x17   :  { %377 = vsyncadd [#allocation3], 4294967168 }
  0x18   :  { %378 = dma.done.wait [#allocation6], 128  }
  0x19   :  { %379 = vsyncadd [#allocation6], 4294967168  ;;  %v384_v0 = vmov 0   ;;  %v385_v1 = vmov 0.0   ;;  %vm386_vm0 = vmmov 0   ;;  %v45_v2 = vld [vmem:[%s437_s0] sm:$0xff]  ;;  %v46_v10 = vlaneseq }
  0x1a   :  { %319 = vset.pattern.permute.xlu0 %v384_v0  ;;  %299 = vmatprep.subr.mxu0 %v385_v1  ;;  %v44_v3 = vld [vmem:[#allocation5] sm:$0xff]  ;;  %v42_v4 = vld [vmem:[%s438_s1] sm:$0xff]  ;;  %vm129_vm1 = vcmask 261120   ;;  %vm54_vm2 = vcmask 64512   ;;  %vm236_vm5 = vcmask 7168   ;;  %s387_s30 = smov [#allocation7]  }
  0x1b   :  { %304 = vmatprep.subr.mxu1 %v385_v1  ;;  %301 = vmatprep.mubr.msk.f32.mxu0 %vm386_vm0, %v385_v1  ;;  %v128_v5 = vmul.f32 %v42_v4, %v42_v4  ;;  %v43_v7 = vld [vmem:[#allocation2] sm:$0xff]  ;;  %v47_v11 = vand.u32 127, %v46_v10 }
  0x1c   :  { %306 = vmatprep.mubr.msk.f32.mxu1 %vm386_vm0, %v385_v1  ;;  %49 = vperm.xlu0 %319, %v45_v2   ;;  %v136_v8 = vmul.f32 %v43_v7, %v43_v7 }
  0x1d   :  { %300 = vmatpush3.msra.mxu0 %v44_v3  ;;  %v130_v6 = vsel %vm129_vm1, %v128_v5, 0.0 }
  0x1e   :  { %131 = vadd.xlane.f32.xlu1 %v130_v6  ;;  %v137_v9 = vsel %vm129_vm1, %v136_v8, 0.0 }
  0x3b   :  { %138 = vadd.xlane.f32.xlu0 %v137_v9 }
  0x97   :  { %v50_v12 = vpop.permute.xlu0 %49 }
  0x98   :  { %vm51_vm3 = vcmp.eq.s32.totalorder %v47_v11, %v50_v12 }
  0x99   :  { %v291_v13 = vsel %vm51_vm3, 1.0, %v385_v1 }
  0x9a   :  { %302 = vmatmul.mubr.msk.f32.vlgmr.msra.gmra.mxu0 %vm54_vm2, %v291_v13 }
  0xa7   :  { %v132_v14 = vpop.xlane.xlu1 %131 }
  0xa8   :  { %v133_v15 = vmax.f32 %v132_v14, 1e-24 }
  0xaa   :  { %320 = vrsqrt.f32 %v133_v15 }
  0xb7   :  { %v321_v18 = vpop.eup %320 }
  0xb8   :  { %v135_v21 = vmul.f32 %v321_v18, %v42_v4 }
  0xc4   :  { %v139_v16 = vpop.xlane.xlu0 %138 }
  0xc5   :  { %v140_v17 = vmax.f32 %v139_v16, 1e-24 }
  0xc7   :  { %322 = vrsqrt.f32 %v140_v17 }
  0xd4   :  { %v323_v19 = vpop.eup %322 }
  0xd5   :  { %v142_v20 = vmul.f32 %v323_v19, %v43_v7 }
  0xd7   :  { %305 = vmatpush3.xpose.msk.msra.mxu1 %vm129_vm1, %v142_v20 }
  0xda   :  { %307 = vmatmul.mubr.msk.f32.vlgmr.msra.gmra.mxu1 %vm129_vm1, %v135_v21 }
 0x15a   :  { %v124_v22 = vpop.f32.mrf.mxu0 }
 0x15b   :  { %v143_v23 = vmul.f32 %v124_v22, %v124_v22  ;;  %v250_v24 = vsub.f32 %v44_v3, %v124_v22 }
 0x15c   :  { %v303_v25 = vpop.f32.mrf.mxu0 }
 0x15d   :  { %v144_v26 = vsel %vm129_vm1, %v143_v23, 0.0  ;;  %v251_v27 = vmul.f32 %v250_v24, %v250_v24 }
 0x15e   :  { %145 = vadd.xlane.f32.xlu1 %v144_v26 }
 0x15f   :  { %v252_v28 = vsel %vm129_vm1, %v251_v27, 0.0 }
 0x162   :  { %253 = vadd.xlane.f32.xlu1 %v252_v28 }
 0x19a   :  { %v222_v29 = vpop.f32.mrf.mxu1 }
 0x19b   :  { %v226_v30 = vsel %vm54_vm2, %v222_v29, -inf }
 0x19c   :  { %v308_v31 = vpop.f32.mrf.mxu1  ;;  %227 = vmax.xlane.f32.xlu1 %v226_v30 }
 0x1e7   :  { %v146_v32 = vpop.xlane.xlu1 %145 }
 0x1e8   :  { %v147_v33 = vmax.f32 %v146_v32, 1e-24 }
 0x1ea   :  { %324 = vrsqrt.f32 %v147_v33 }
 0x1eb   :  { %v254_v38 = vpop.xlane.xlu1 %253 }
 0x1ec   :  { %326 = vrsqrt.f32 %v254_v38  ;;  %vm257_vm4 = vcmp.eq.f32.partialorder %v254_v38, inf  ;;  %v260_v47 = vand.u32 2147483648, %v254_v38  ;;  %vm259_vm6 = vcmp.eq.f32.partialorder %v254_v38, 0.0 }
 0x1f7   :  { %v325_v34 = vpop.eup %324 }
 0x1f8   :  { %v149_v35 = vmul.f32 %v325_v34, %v124_v22 }
 0x1f9   :  { %v327_v40 = vpop.eup %326 }
 0x1fa   :  { %v229_v36 = vmul.f32 %v149_v35, %v135_v21  ;;  %v256_v43 = vmul.f32 %v327_v40, %v254_v38 }
 0x1fc   :  { %v230_v37 = vsel %vm129_vm1, %v229_v36, 0.0  ;;  %v258_v46 = vsel %vm257_vm4, %v254_v38, %v256_v43 }
 0x1fd   :  { %231 = vadd.xlane.f32.xlu1 %v230_v37  ;;  %v261_v49 = vsel %vm259_vm6, %v260_v47, %v258_v46 }
 0x1fe   :  { %v262_v50 = vsel %vm236_vm5, %v261_v49, 0.0 }
 0x225   :  { %v228_v39 = vpop.xlane.xlu1 %227 }
 0x286   :  { %v232_v41 = vpop.xlane.xlu1 %231 }
 0x287   :  { %v233_v42 = vsub.f32 %v228_v39, %v232_v41 }
 0x289   :  { %v234_v44 = vadd.f32 0.2, %v233_v42 }
 0x28b   :  { %v235_v45 = vmax.f32 %v234_v44, 0.0 }
 0x28d   :  { %v237_v48 = vsel %vm236_vm5, %v235_v45, 0.0 }
 0x28e   :  { %238 = vadd.xlane.f32.xlu1 %v237_v48 }
 0x292   :  { %263 = vadd.xlane.f32.xlu1 %v262_v50 }
 0x317   :  { %v239_v51 = vpop.xlane.xlu1 %238 }
 0x318   :  { %v240_v52 = vrot.slane %v239_v51, 4 }
 0x31a   :  { %v241_v53 = vadd.f32 %v240_v52, %v239_v51 }
 0x31b   :  { %v264_v54 = vpop.xlane.xlu1 %263 }
 0x31c   :  { %v242_v55 = vrot.slane %v241_v53, 2  ;;  %v265_v56 = vrot.slane %v264_v54, 4 }
 0x31e   :  { %v266_v57 = vadd.f32 %v265_v56, %v264_v54  ;;  %v243_v58 = vadd.f32 %v242_v55, %v241_v53 }
 0x320   :  { %v267_v59 = vrot.slane %v266_v57, 2  ;;  %v244_v60 = vrot.slane %v243_v58, 1 }
 0x322   :  { %v268_v61 = vadd.f32 %v267_v59, %v266_v57  ;;  %v245_v62 = vadd.f32 %v244_v60, %v243_v58 }
 0x324   :  { %309 = vpush %v245_v62  ;;  %v269_v63 = vrot.slane %v268_v61, 1 }
 0x326   :  { %v270_v0 = vadd.f32 %v269_v63, %v268_v61 }
 0x328   :  { %311 = vpush %v270_v0 }
 0x355   :  { %s310_s0 = spop %309 }
 0x356   :  { %s249_s1 = smul.f32 0.125, %s310_s0 }
 0x359   :  { %s312_s27 = spop %311 }
 0x35a   :  { %s272_s28 = smul.f32 0.01, %s312_s27 }
 0x35c   :  { %s273_s29 = sadd.f32 %s272_s28, %s249_s1 }
 0x35e   :  { %275 = sst [smem:[#allocation7]] %s273_s29 }
 0x35f   :  { %283 = dma.smem_to_hbm %s387_s30, 16, %s441_s4, [#allocation4]  }
 0x360   :  { %380 = dma.done.wait [#allocation4], 16  }
 0x361   :  { %381 = vsyncadd [#allocation4], 4294967280 }
 0x362   :  { %287 = sfence }
 0x363   :  { %288 = vsyncpa [#allocation3], 1 }
 0x364   :  { %289 = vsyncpa [#allocation6], 1 }
 0x365   :  { %290 = vsyncpa [#allocation4], 1 }

</bundles_post_ra>
